<compile_context>
chip_gen: v7x
topology: tpu7x:2x2x1
jax: 0.10.0
libtpu: 0.0.40
codegen_flags: <defaults>
</compile_context>

<pallas_src>
import numpy as np
import jax
import jax.numpy as jnp
from jax import lax
from jax.experimental import pallas as pl
from jax.experimental.pallas import tpu as pltpu


def _round_up(v: int, m: int) -> int:
    return ((v + m - 1) // m) * m


def _pick_tm(n: int, itemsize: int, group: int | None = None) -> int:
    """Largest row tile TM that is a multiple of 8, divides n, keeps one x
    block <= ~4 MiB (double-buffered blocks stay inside scoped-VMEM defaults on
    v5e/v6e and leave headroom on the 64 MiB v7x part), and — if `group` is
    given (weight-row path) — also divides `group` so a tile never straddles a
    batch-group boundary."""
    target_bytes = 4 * 1024 * 1024
    cap = max(8, target_bytes // max(1, n * itemsize))
    cap -= cap % 8
    cap = max(8, min(cap, n))
    limit = n if group is None else min(n, group)
    cap = min(cap, limit)
    cap = max(8, cap - (cap % 8))
    for tm in range(cap, 7, -8):
        if limit % tm == 0 and n % tm == 0:
            return tm
    return 8


def _make_kernel(*, tm: int, use_mask: bool, weight_row: bool,
                 diag_w: float, off_w: float):
    n_slabs = tm // 8

    def _compute(x_ref, dcol_ref, drow_ref, w_ref, gcol_ref, grow_ref,
                 o_ref, acc_ref):
        # Per-step (8, N) f32 accumulator; zeroed every step so the grid axis
        # carries nothing and can be 'parallel' (megacore on v7x).
        acc_ref[...] = jnp.zeros_like(acc_ref)

        def slab(s, carry):
            r = s * 8
            if not isinstance(r, int):
                r = pl.multiple_of(r, 8)
            xs = x_ref[pl.ds(r, 8), :].astype(jnp.float32)
            # Margin already folded into the diag vectors (d' = d - margin).
            mm = (jnp.maximum(xs - dcol_ref[pl.ds(r, 8), :], 0.0)
                  + jnp.maximum(xs - drow_ref[...], 0.0))
            if use_mask:
                if weight_row:
                    # One (1, N) per-group weight row for the whole tile.
                    mm = mm * w_ref[0]
                else:
                    # In-kernel mm_mask regeneration: compare + select between
                    # two scalar constants (kron block structure of the mask).
                    same = gcol_ref[pl.ds(r, 8), :] == grow_ref[...]
                    mm = mm * jnp.where(same, jnp.float32(diag_w),
                                        jnp.float32(off_w))
            acc_ref[...] += mm
            return carry

        if n_slabs == 1:
            slab(0, 0)
        else:
            lax.fori_loop(0, n_slabs, slab, 0,
                          unroll=True if n_slabs <= 8 else 4)

        # Single per-step XLU reduce; scalar goes straight to the SMEM output.
        o_ref[0, 0] = jnp.sum(acc_ref[...])

    if not use_mask:
        def kernel(x_ref, dcol_ref, drow_ref, o_ref, acc_ref):
            _compute(x_ref, dcol_ref, drow_ref, None, None, None,
                     o_ref, acc_ref)
    elif weight_row:
        def kernel(x_ref, dcol_ref, drow_ref, w_ref, o_ref, acc_ref):
            _compute(x_ref, dcol_ref, drow_ref, w_ref, None, None,
                     o_ref, acc_ref)
    else:
        def kernel(x_ref, dcol_ref, drow_ref, gcol_ref, grow_ref, o_ref,
                   acc_ref):
            _compute(x_ref, dcol_ref, drow_ref, None, gcol_ref, grow_ref,
                     o_ref, acc_ref)
    return kernel


def max_margin_ranking_loss(x, *, margin=1.0, negative_weighting=False,
                            batch_size=1, n_pair=1, hard_negative_rate=0.5):
    """Pallas-backed forward of MaxMarginRankingLoss. x: (N, N), N = batch*n_pair."""
    n = x.shape[0]
    assert x.shape == (n, n), "x must be a square similarity matrix"

    use_mask = bool(negative_weighting and n_pair > 1 and batch_size > 1)
    if use_mask:
        easy = 1.0 - hard_negative_rate
        alpha = easy / ((batch_size - 1) * (1.0 - easy))
        scale = batch_size * (1.0 - easy)
        diag_w = float(scale)            # same batch group
        off_w = float(scale * alpha)     # different batch group
    else:
        diag_w = off_w = 1.0

    # Host-side O(N) precompute; margin folded in so the kernel has no +margin.
    d = jnp.diagonal(x).astype(jnp.float32) - jnp.float32(margin)

    # Pad N to a multiple of 8 so row tiles stay (8,128)-legal. Padded x
    # entries are -1e30 => both relu terms are exactly 0 there, so the sum
    # (divided by the ORIGINAL n*n) is unchanged.
    n_p = _round_up(n, 8)
    if n_p != n:
        xp = jnp.full((n_p, n_p), -1e30, dtype=x.dtype)
        x = xp.at[:n, :n].set(x)
        d = jnp.pad(d, (0, n_p - n))

    d_col = d.reshape(n_p, 1)
    d_row = d.reshape(1, n_p)

    itemsize = jnp.dtype(x.dtype).itemsize
    # Weight-row path only when every row tile can sit inside one batch group.
    weight_row = bool(use_mask and (n_pair % 8 == 0))
    tm = _pick_tm(n_p, itemsize, group=n_pair if weight_row else None)
    grid_len = n_p // tm

    inputs = [x, d_col, d_row]
    in_specs = [
        pl.BlockSpec((tm, n_p), lambda i: (i, 0)),   # x row block (lane-dense)
        pl.BlockSpec((tm, 1), lambda i: (i, 0)),     # d' column slice
        pl.BlockSpec((1, n_p), lambda i: (0, 0)),    # d' row (resident)
    ]
    side_bytes = tm * 128 * 4 + 8 * n_p * 4
    if use_mask:
        if weight_row:
            col_grp = np.arange(n_p) // n_pair
            w_tbl = np.where(col_grp[None, :] == np.arange(batch_size)[:, None],
                             diag_w, off_w).astype(np.float32)
            inputs.append(jnp.asarray(w_tbl.reshape(batch_size, 1, n_p)))
            in_specs.append(
                pl.BlockSpec((1, 1, n_p),
                             lambda i: ((i * tm) // n_pair, 0, 0)))
            side_bytes += 8 * n_p * 4
        else:
            # Group ids as exact small-integer floats (N/n_pair << 2**24).
            grp = (np.arange(n_p) // n_pair).astype(np.float32)
            inputs.append(jnp.asarray(grp.reshape(n_p, 1)))
            inputs.append(jnp.asarray(grp.reshape(1, n_p)))
            in_specs.append(pl.BlockSpec((tm, 1), lambda i: (i, 0)))
            in_specs.append(pl.BlockSpec((1, n_p), lambda i: (0, 0)))
            side_bytes += tm * 128 * 4 + 8 * n_p * 4

    kernel = _make_kernel(tm=tm, use_mask=use_mask, weight_row=weight_row,
                          diag_w=diag_w, off_w=off_w)

    # Scoped-VMEM budget: double-buffered blocks + (8, N) accumulator + slack.
    # Live in-kernel temporaries are now only ~(8, N) f32 per slab.
    need = 2 * (tm * n_p * itemsize + side_bytes) + 8 * n_p * 4 + (2 << 20)
    vmem_limit = int(min(max(need, 32 << 20), 48 << 20))

    partial = pl.pallas_call(
        kernel,
        out_shape=jax.ShapeDtypeStruct((grid_len, 1), jnp.float32),
        grid=(grid_len,),
        in_specs=in_specs,
        # Disjoint per-step scalar partial sums -> the grid axis is truly
        # parallel (sharded across both TensorCores on v7x).
        out_specs=pl.BlockSpec((1, 1), lambda i: (i, 0),
                               memory_space=pltpu.SMEM),
        scratch_shapes=[pltpu.VMEM((8, n_p), jnp.float32)],
        compiler_params=pltpu.CompilerParams(
            dimension_semantics=("parallel",),
            vmem_limit_bytes=vmem_limit),
    )(*inputs)

    # Final mean: trivial XLA reduce over grid_len partials.
    return jnp.sum(partial) * (1.0 / float(n * n))


def build_mm_mask(batch_size, n_pair, hard_negative_rate):
    """Deterministic reproduction of the mm_mask built in the torch __init__."""
    easy_negative_rate = 1.0 - hard_negative_rate
    alpha = easy_negative_rate / ((batch_size - 1) * (1.0 - easy_negative_rate))
    mm_mask = (1.0 - alpha) * np.eye(batch_size) + alpha
    mm_mask = np.kron(mm_mask, np.ones((n_pair, n_pair)))
    mm_mask = mm_mask * (batch_size * (1.0 - easy_negative_rate))
    return jnp.asarray(mm_mask, dtype=jnp.float32)


def reference_loss(x, mm_mask, margin=1.0, negative_weighting=True):
    d = jnp.diag(x.astype(jnp.float32))
    mm = (jax.nn.relu(margin + x.astype(jnp.float32) - d[:, None])
          + jax.nn.relu(margin + x.astype(jnp.float32) - d[None, :]))
    if negative_weighting:
        mm = mm * mm_mask
    return jnp.mean(mm)


if __name__ == "__main__":
    key = jax.random.PRNGKey(0)
    k1, k2 = jax.random.split(key)
    margin = 1.0

    # Config 1: batch_size=4, n_pair=2 -> N=8; weighted, compare-path mask.
    b1, p1, hnr1 = 4, 2, 0.5
    n1 = b1 * p1
    x1 = jax.random.normal(k1, (n1, n1), dtype=jnp.float32)
    loss1 = max_margin_ranking_loss(
        x1, margin=margin, negative_weighting=True,
        batch_size=b1, n_pair=p1, hard_negative_rate=hnr1)
    loss1 = jax.block_until_ready(loss1)
    ref1 = reference_loss(x1, build_mm_mask(b1, p1, hnr1), margin, True)
    if not np.allclose(np.asarray(loss1), np.asarray(ref1), rtol=1e-5, atol=1e-5):
        raise AssertionError(f"mismatch (weighted, compare): {loss1} vs {ref1}")

    # Config 2: batch_size=2, n_pair=8 -> N=16; weighted, weight-row path.
    b2, p2, hnr2 = 2, 8, 0.25
    n2 = b2 * p2
    x2 = jax.random.normal(k2, (n2, n2), dtype=jnp.float32)
    loss2 = max_margin_ranking_loss(
        x2, margin=margin, negative_weighting=True,
        batch_size=b2, n_pair=p2, hard_negative_rate=hnr2)
    loss2 = jax.block_until_ready(loss2)
    ref2 = reference_loss(x2, build_mm_mask(b2, p2, hnr2), margin, True)
    if not np.allclose(np.asarray(loss2), np.asarray(ref2), rtol=1e-5, atol=1e-5):
        raise AssertionError(f"mismatch (weighted, weight-row): {loss2} vs {ref2}")

    # Config 3: unweighted path (negative_weighting=False).
    loss3 = max_margin_ranking_loss(
        x1, margin=margin, negative_weighting=False,
        batch_size=b1, n_pair=p1, hard_negative_rate=hnr1)
    loss3 = jax.block_until_ready(loss3)
    ref3 = reference_loss(x1, build_mm_mask(b1, p1, hnr1), margin, False)
    if not np.allclose(np.asarray(loss3), np.asarray(ref3), rtol=1e-5, atol=1e-5):
        raise AssertionError(f"mismatch (unweighted): {loss3} vs {ref3}")

    print("KERNEL_OK")
</pallas_src>

<mosaic_0001>
module attributes {stable_mosaic.version = 11 : i64} {
  func.func @kernel(%arg0: i32, %arg1: memref<8x8xf32, #tpu.memory_space<vmem>>, %arg2: memref<8x1xf32, #tpu.memory_space<vmem>>, %arg3: memref<1x8xf32, #tpu.memory_space<vmem>>, %arg4: memref<8x1xf32, #tpu.memory_space<vmem>>, %arg5: memref<1x8xf32, #tpu.memory_space<vmem>>, %arg6: memref<1x1xf32, #tpu.memory_space<smem>>, %arg7: memref<8x8xf32, #tpu.memory_space<vmem>>) attributes {dimension_semantics = [#tpu.dimension_semantics<parallel>], iteration_bounds = array<i64: 1>, scalar_prefetch = 0 : i64, scratch_operands = 1 : i64, tpu.core_type = #tpu.core_type<tc>, window_params = [{transform_indices = @transform_0, window_bounds = array<i64: 8, 8>}, {transform_indices = @transform_1, window_bounds = array<i64: 8, 1>}, {pipeline_mode = #tpu.pipeline_mode<synchronous>, transform_indices = @transform_2, window_bounds = array<i64: 1, 8>}, {transform_indices = @transform_3, window_bounds = array<i64: 8, 1>}, {pipeline_mode = #tpu.pipeline_mode<synchronous>, transform_indices = @transform_4, window_bounds = array<i64: 1, 8>}, {transform_indices = @transform_5, window_bounds = array<i64: 1, 1>}]} {
    %cst = arith.constant 0.000000e+00 : f32
    %0 = vector.broadcast %cst : f32 to vector<8x8xf32>
    %c0 = arith.constant 0 : index
    %c0_0 = arith.constant 0 : index
    %1 = vector.load %arg7[%c0, %c0_0] : memref<8x8xf32, #tpu.memory_space<vmem>>, vector<8x8xf32>
    tpu.vector_store %arg7[%c0, %c0_0], %0 {strides = array<i32>} : memref<8x8xf32, #tpu.memory_space<vmem>>, vector<8x8xf32>,
    %c0_1 = arith.constant 0 : index
    %c0_2 = arith.constant 0 : index
    %2 = vector.load %arg1[%c0_1, %c0_2] : memref<8x8xf32, #tpu.memory_space<vmem>>, vector<8x8xf32>
    %c0_3 = arith.constant 0 : index
    %c0_4 = arith.constant 0 : index
    %3 = vector.load %arg2[%c0_3, %c0_4] : memref<8x1xf32, #tpu.memory_space<vmem>>, vector<8x1xf32>
    %4 = vector.broadcast %3 : vector<8x1xf32> to vector<8x8xf32>
    %5 = arith.subf %2, %4 : vector<8x8xf32>
    %cst_5 = arith.constant 0.000000e+00 : f32
    %6 = vector.broadcast %cst_5 : f32 to vector<8x8xf32>
    %7 = arith.maximumf %5, %6 : vector<8x8xf32>
    %c0_6 = arith.constant 0 : index
    %c0_7 = arith.constant 0 : index
    %8 = vector.load %arg3[%c0_6, %c0_7] : memref<1x8xf32, #tpu.memory_space<vmem>>, vector<1x8xf32>
    %9 = vector.broadcast %8 : vector<1x8xf32> to vector<8x8xf32>
    %10 = arith.subf %2, %9 : vector<8x8xf32>
    %cst_8 = arith.constant 0.000000e+00 : f32
    %11 = vector.broadcast %cst_8 : f32 to vector<8x8xf32>
    %12 = arith.maximumf %10, %11 : vector<8x8xf32>
    %13 = arith.addf %7, %12 : vector<8x8xf32>
    %c0_9 = arith.constant 0 : index
    %c0_10 = arith.constant 0 : index
    %14 = vector.load %arg4[%c0_9, %c0_10] : memref<8x1xf32, #tpu.memory_space<vmem>>, vector<8x1xf32>
    %c0_11 = arith.constant 0 : index
    %c0_12 = arith.constant 0 : index
    %15 = vector.load %arg5[%c0_11, %c0_12] : memref<1x8xf32, #tpu.memory_space<vmem>>, vector<1x8xf32>
    %16 = vector.broadcast %14 : vector<8x1xf32> to vector<8x8xf32>
    %17 = vector.broadcast %15 : vector<1x8xf32> to vector<8x8xf32>
    %18 = arith.cmpf oeq, %16, %17 : vector<8x8xf32>
    %cst_13 = arith.constant 2.000000e+00 : f32
    %cst_14 = arith.constant 0.666666686 : f32
    %19 = vector.broadcast %cst_13 : f32 to vector<8x8xf32>
    %20 = vector.broadcast %cst_14 : f32 to vector<8x8xf32>
    %21 = arith.select %18, %19, %20 : vector<8x8xi1>, vector<8x8xf32>
    %22 = arith.mulf %13, %21 : vector<8x8xf32>
    %c0_15 = arith.constant 0 : index
    %c0_16 = arith.constant 0 : index
    %23 = vector.load %arg7[%c0_15, %c0_16] : memref<8x8xf32, #tpu.memory_space<vmem>>, vector<8x8xf32>
    %24 = arith.addf %23, %22 : vector<8x8xf32>
    %c0_17 = arith.constant 0 : index
    %c0_18 = arith.constant 0 : index
    %25 = vector.load %arg7[%c0_17, %c0_18] : memref<8x8xf32, #tpu.memory_space<vmem>>, vector<8x8xf32>
    tpu.vector_store %arg7[%c0_17, %c0_18], %24 {strides = array<i32>} : memref<8x8xf32, #tpu.memory_space<vmem>>, vector<8x8xf32>,
    %c0_19 = arith.constant 0 : index
    %c0_20 = arith.constant 0 : index
    %26 = vector.load %arg7[%c0_19, %c0_20] : memref<8x8xf32, #tpu.memory_space<vmem>>, vector<8x8xf32>
    %27 = vector.shape_cast %26 : vector<8x8xf32> to vector<1x8x8xf32>
    %cst_21 = arith.constant dense<0.000000e+00> : vector<1xf32>
    %28 = vector.multi_reduction <add>, %27, %cst_21 [1, 2] : vector<1x8x8xf32> to vector<1xf32>
    %29 = vector.shape_cast %28 : vector<1xf32> to vector<1x1x1xf32>
    %30 = vector.extract %29[0, 0, 0] : f32 from vector<1x1x1xf32>
    %c0_22 = arith.constant 0 : index
    %c0_23 = arith.constant 0 : index
    %31 = memref.load %arg6[%c0_22, %c0_23] : memref<1x1xf32, #tpu.memory_space<smem>>
    memref.store %30, %arg6[%c0_22, %c0_23] : memref<1x1xf32, #tpu.memory_space<smem>>
    return
  }
  func.func @transform_0(%arg0: i32) -> (i32, i32) {
    %c0_i32 = arith.constant 0 : i32
    %c0_i32_0 = arith.constant 0 : i32
    return %arg0, %c0_i32 : i32, i32
  }
  func.func @transform_1(%arg0: i32) -> (i32, i32) {
    %c0_i32 = arith.constant 0 : i32
    %c0_i32_0 = arith.constant 0 : i32
    return %arg0, %c0_i32 : i32, i32
  }
  func.func @transform_2(%arg0: i32) -> (i32, i32) {
    %c0_i32 = arith.constant 0 : i32
    %c0_i32_0 = arith.constant 0 : i32
    %c0_i32_1 = arith.constant 0 : i32
    return %c0_i32, %c0_i32_0 : i32, i32
  }
  func.func @transform_3(%arg0: i32) -> (i32, i32) {
    %c0_i32 = arith.constant 0 : i32
    %c0_i32_0 = arith.constant 0 : i32
    return %arg0, %c0_i32 : i32, i32
  }
  func.func @transform_4(%arg0: i32) -> (i32, i32) {
    %c0_i32 = arith.constant 0 : i32
    %c0_i32_0 = arith.constant 0 : i32
    %c0_i32_1 = arith.constant 0 : i32
    return %c0_i32, %c0_i32_0 : i32, i32
  }
  func.func @transform_5(%arg0: i32) -> (i32, i32) {
    %c0_i32 = arith.constant 0 : i32
    %c0_i32_0 = arith.constant 0 : i32
    return %arg0, %c0_i32 : i32, i32
  }
}

</mosaic_0001>

<bundles_post_ra>
// kernel: tpu_custom_call.1
= control target key start
LH: loop header
LB: loop body
LE: loop exit
PB: predicated region body
PF: predicated region fallthrough
CT: control target
= control target key end

     0   :  { %v108_v1 = vmov 0   ;;  %vm21_vm0 = vcmask 64512   ;;  %s172_s0 = inlined_call_operand.vmem [shape: f32[8,8], index: 0, kind: input, shape index: {}]   ;;  %s173_s1 = inlined_call_operand.vmem [shape: f32[8,1], index: 1, kind: input, shape index: {}]   ;;  %s174_s2 = inlined_call_operand.vmem [shape: f32[1,8], index: 2, kind: input, shape index: {}]   ;;  %s175_s3 = inlined_call_operand.vmem [shape: f32[8,1], index: 3, kind: input, shape index: {}]   ;;  %s176_s4 = inlined_call_operand.vmem [shape: f32[1,8], index: 4, kind: input, shape index: {}]   ;;  %s177_s5 = inlined_call_operand.hbm [shape: f32[1,1], index: 5, kind: output, shape index: {}]  }
   0x1   :  { %v24_v0 = vld [vmem:[%s173_s1] sm:$0xff]  ;;  %95 = vset.pattern.permute.xlu0 %v108_v1 }
   0x2   :  { %10 = vsyncpa [#allocation4], 0  ;;  %27 = vperm.xlu0 %95, %v24_v0   ;;  %v109_v2 = vmov 0.0   ;;  %v42_v3 = vld [vmem:[%s175_s3] sm:$0xff]  ;;  %v110_v14 = vmov 0.6666667  }
   0x3   :  { %22 = vst.msk [vmem:[#allocation2] sm:$0xff] %vm21_vm0, %v109_v2  ;;  %v87_v4 = vld [vmem:[%s174_s2] ss:$0 sm:$0xff] }
   0x4   :  { %v23_v5 = vld [vmem:[%s172_s0] sm:$0xff] }
   0x5   :  { %v39_v6 = vsub.f32 %v23_v5, %v87_v4  ;;  %v88_v10 = vld [vmem:[%s176_s4] ss:$0 sm:$0xff]  ;;  %s96_s4 = scalar_lea.hbm %s177_s5, 16 }
   0x6   :  { %46 = vperm.xlu0 %95, %v42_v3   ;;  %p97_p0 = scmp.ne.s32.totalorder %s177_s5, %s96_s4  ;;  %p100_p1 = scmp.lt.u32.totalorder %s96_s4, %s177_s5 }
   0x7   :  { %v40_v9 = vmax.f32 %v39_v6, 0.0 }
   0x8   :  { %p102_p2 = pnand %p100_p1, %p97_p0 }
   0xa   :  { %v58_v16 = vld [vmem:[#allocation2] sm:$0xff] }
  0x81   :  { %v28_v7 = vpop.permute.xlu0 %27 }
  0x82   :  { %v30_v8 = vsub.f32 %v23_v5, %v28_v7 }
  0x84   :  { %v31_v11 = vmax.f32 %v30_v8, 0.0 }
  0x85   :  { %v47_v12 = vpop.permute.xlu0 %46 }
  0x86   :  { %v41_v13 = vadd.f32 %v40_v9, %v31_v11  ;;  %vm55_vm1 = vcmp.eq.f32.partialorder %v47_v12, %v88_v10 }
  0x87   :  { %v56_v15 = vsel %vm55_vm1, 2.0, %v110_v14 }
  0x88   :  { %v57_v17 = vmul.f32 %v56_v15, %v41_v13 }
  0x8a   :  { %v59_v18 = vadd.f32 %v58_v16, %v57_v17 }
  0x8c   :  { %60 = vst.msk [vmem:[#allocation2] sm:$0xff] %vm21_vm0, %v59_v18 }
  0x93   :  { %v61_v19 = vld [vmem:[#allocation2] sm:$0xff] }
  0x94   :  { %v62_v20 = vsel %vm21_vm0, %v61_v19, 0.0 }
  0x95   :  { %63 = vadd.xlane.f32.xlu1 %v62_v20 }
 0x122   :  { %v64_v21 = vpop.xlane.xlu1 %63 }
 0x123   :  { %v65_v22 = vrot.slane %v64_v21, 4 }
 0x125   :  { %v66_v23 = vadd.f32 %v65_v22, %v64_v21 }
 0x127   :  { %v67_v24 = vrot.slane %v66_v23, 2 }
 0x129   :  { %v68_v25 = vadd.f32 %v67_v24, %v66_v23 }
 0x12b   :  { %v69_v26 = vrot.slane %v68_v25, 1 }
 0x12d   :  { %v70_v27 = vadd.f32 %v69_v26, %v68_v25 }
 0x12f   :  { %89 = vpush %v70_v27 }
 0x160   :  { %s90_s0 = spop %89 }
 0x161   :  { %73 = sst [smem:[#allocation3]] %s90_s0 }
 0x162   :  { %105 = shalt.err (!%p102_p2)
}
 0x163   :  { %s111_s6 = smov [#allocation3]  }
 0x164   :  { %81 = dma.smem_to_hbm %s111_s6, 16, %s177_s5, [#allocation4]  }
 0x165   :  { %106 = dma.done.wait [#allocation4], 16  }
 0x166   :  { %107 = vsyncadd [#allocation4], 4294967280 }
 0x167   :  { %85 = sfence }
 0x168   :  { %86 = vsyncpa [#allocation4], 1 }

</bundles_post_ra>
